<compile_context>
chip_gen: v5e
topology: v5e:2x2
jax: 0.10.0
libtpu: 0.0.40
codegen_flags: <defaults>
</compile_context>

<pallas_src>
import jax
import jax.numpy as jnp
from jax.experimental import pallas as pl
from jax.experimental.pallas import tpu as pltpu


def _round_up(x, m):
    return ((x + m - 1) // m) * m


def _vmem_budget_bytes():
    """Generation-aware (working-set budget, scoped vmem limit) in bytes."""
    cap = None
    try:
        info = pltpu.get_tpu_info()
        cap = (getattr(info, "vmem_capacity_bytes", None)
               or getattr(info, "vmem_size_bytes", None))
    except Exception:
        cap = None
    if not cap:
        cap = 64 * 1024 * 1024          # conservative default (v7x per-core VMEM)
    if cap >= 128 * 1024 * 1024:        # v5e / v6e: 128 MiB physical
        return 96 * 1024 * 1024, 100 * 1024 * 1024
    return 40 * 1024 * 1024, 48 * 1024 * 1024   # v7x: 64 MiB physical


# ----------------------------------------------------------------------------- kernels

def _unembed_kernel(x_ref, w_ref, b_ref, o_ref):
    # Single MXU matmul over the full d_model (no reduction grid axis):
    # f32 accumulation, bias add, cast, lane-dense store.
    acc = jnp.dot(x_ref[...], w_ref[...], preferred_element_type=jnp.float32)
    o_ref[...] = (acc + b_ref[...].astype(jnp.float32)).astype(o_ref.dtype)


def _unembed_kernel_ktiled(x_ref, w_ref, b_ref, o_ref, acc_ref):
    # Fallback for very large d_model: K grid axis (innermost, "arbitrary"),
    # f32 accumulator scratch, bias fused into the finalize phase.
    k = pl.program_id(2)

    @pl.when(k == 0)
    def _():
        acc_ref[...] = jnp.zeros_like(acc_ref)

    acc_ref[...] += jnp.dot(x_ref[...], w_ref[...],
                            preferred_element_type=jnp.float32)

    @pl.when(k == pl.num_programs(2) - 1)
    def _():
        o_ref[...] = (acc_ref[...] + b_ref[...].astype(jnp.float32)
                      ).astype(o_ref.dtype)


# ----------------------------------------------------------------------------- tiling

def _pick_tiles(M, V, D, x_bytes, w_bytes, o_bytes, budget):
    """Largest full-K (tm, tn) whose double-buffered working set fits `budget`."""
    tm = min(512, _round_up(M, 16))
    tn = min(4096, _round_up(V, 128))

    def ws(tm_, tn_):
        return (2 * tm_ * D * x_bytes        # x slab       (double buffered)
                + 2 * D * tn_ * w_bytes      # W_U slab     (double buffered)
                + 2 * tn_ * w_bytes          # bias slab    (double buffered)
                + 2 * tm_ * tn_ * o_bytes)   # output tile  (double buffered)

    while ws(tm, tn) > budget and tn > 512:
        tn = max(512, _round_up(tn // 2, 128))
    while ws(tm, tn) > budget and tm > 64:
        tm = max(64, _round_up(tm // 2, 16))
    while ws(tm, tn) > budget and tn > 128:
        tn = max(128, _round_up(tn // 2, 128))
    while ws(tm, tn) > budget and tm > 16:
        tm = max(16, _round_up(tm // 2, 16))
    return tm, tn, ws(tm, tn) <= budget


def _pick_tiles_ktiled(M, V, D, x_bytes, w_bytes, o_bytes, budget):
    tm = min(256, _round_up(M, 16))
    tn = min(1024, _round_up(V, 128))
    tk = min(2048, _round_up(D, 128))

    def ws(tm_, tn_, tk_):
        return (2 * tm_ * tk_ * x_bytes
                + 2 * tk_ * tn_ * w_bytes
                + 2 * tn_ * w_bytes
                + 2 * tm_ * tn_ * o_bytes
                + tm_ * tn_ * 4)             # f32 accumulator scratch

    while ws(tm, tn, tk) > budget and tk > 512:
        tk = max(512, _round_up(tk // 2, 128))
    while ws(tm, tn, tk) > budget and tn > 256:
        tn = max(256, _round_up(tn // 2, 128))
    while ws(tm, tn, tk) > budget and tm > 16:
        tm = max(16, _round_up(tm // 2, 16))
    while ws(tm, tn, tk) > budget and tk > 128:
        tk = max(128, _round_up(tk // 2, 128))
    return tm, tn, tk


# ----------------------------------------------------------------------------- wrapper

@jax.jit
def unembed(x, w_u, b_u):
    """logits = x @ W_U + b_U.

    x: [batch, position, d_model], w_u: [d_model, d_vocab], b_u: [d_vocab].
    f32 or bf16 operands accepted as-is (bf16 recommended to halve HBM traffic);
    accumulation is always f32.  Matches the PyTorch fp32 forward up to the TPU
    default matmul precision.
    """
    B, S, D = x.shape
    V = w_u.shape[1]
    M = B * S
    out_dtype = x.dtype
    x_bytes = x.dtype.itemsize
    w_bytes = w_u.dtype.itemsize
    b_bytes = b_u.dtype.itemsize
    o_bytes = out_dtype.itemsize

    budget, vmem_limit = _vmem_budget_bytes()

    x2d = x.reshape(M, D)
    b2d = b_u.reshape(1, V)

    tm, tn, fits = _pick_tiles(M, V, D, x_bytes, w_bytes, o_bytes, budget)

    if fits:
        # --- main path: full-K slabs, W_U resident across the inner M loop -----
        grid = (pl.cdiv(V, tn), pl.cdiv(M, tm))   # vocab outer, M inner

        cost = pl.CostEstimate(
            flops=2 * M * D * V,
            transcendentals=0,
            bytes_accessed=(D * V * w_bytes              # W_U streamed once
                            + grid[0] * M * D * x_bytes  # x re-read per vocab slab
                            + V * b_bytes
                            + M * V * o_bytes),          # logits written once
        )

        out2d = pl.pallas_call(
            _unembed_kernel,
            out_shape=jax.ShapeDtypeStruct((M, V), out_dtype),
            grid_spec=pltpu.PrefetchScalarGridSpec(
                num_scalar_prefetch=0,
                grid=grid,
                in_specs=[
                    pl.BlockSpec((tm, D), lambda j, i: (i, 0)),   # x row slab (full K)
                    pl.BlockSpec((D, tn), lambda j, i: (0, j)),   # W_U col slab (resident)
                    pl.BlockSpec((1, tn), lambda j, i: (0, j)),   # bias slab (resident)
                ],
                out_specs=pl.BlockSpec((tm, tn), lambda j, i: (i, j)),
            ),
            compiler_params=pltpu.CompilerParams(
                dimension_semantics=("parallel", "arbitrary"),   # megacore shards vocab
                vmem_limit_bytes=vmem_limit,
            ),
            cost_estimate=cost,
        )(x2d, w_u, b2d)

    else:
        # --- fallback: d_model too large for full-K slabs (mostly v7x / huge D) ---
        tm, tn, tk = _pick_tiles_ktiled(M, V, D, x_bytes, w_bytes, o_bytes, budget)
        D_pad = _round_up(D, tk)
        w2d = w_u
        if D_pad != D:
            # K MUST be zero-padded: ragged K edge blocks would feed undefined
            # data into the contraction (unlike masked M/V edges).
            # TODO(synk): pad W_U once at weight-load time, outside the hot path.
            x2d = jnp.pad(x2d, ((0, 0), (0, D_pad - D)))
            w2d = jnp.pad(w_u, ((0, D_pad - D), (0, 0)))

        grid = (pl.cdiv(V, tn), pl.cdiv(M, tm), D_pad // tk)

        cost = pl.CostEstimate(
            flops=2 * M * D * V,
            transcendentals=0,
            bytes_accessed=(grid[1] * D_pad * V * w_bytes   # W re-read per M slab
                            + grid[0] * M * D_pad * x_bytes # x re-read per vocab slab
                            + V * b_bytes
                            + M * V * o_bytes),
        )

        out2d = pl.pallas_call(
            _unembed_kernel_ktiled,
            out_shape=jax.ShapeDtypeStruct((M, V), out_dtype),
            grid_spec=pltpu.PrefetchScalarGridSpec(
                num_scalar_prefetch=0,
                grid=grid,
                in_specs=[
                    pl.BlockSpec((tm, tk), lambda j, i, k: (i, k)),
                    pl.BlockSpec((tk, tn), lambda j, i, k: (k, j)),
                    pl.BlockSpec((1, tn), lambda j, i, k: (0, j)),
                ],
                out_specs=pl.BlockSpec((tm, tn), lambda j, i, k: (i, j)),
                scratch_shapes=[pltpu.VMEM((tm, tn), jnp.float32)],
            ),
            compiler_params=pltpu.CompilerParams(
                dimension_semantics=("parallel", "arbitrary", "arbitrary"),
                vmem_limit_bytes=vmem_limit,
            ),
            cost_estimate=cost,
        )(x2d, w2d, b2d)

    return out2d.reshape(B, S, V)


if __name__ == "__main__":
    # Small shapes consistent with the module; deliberately NOT multiples of the
    # tile sizes so the ragged-block (no-pad) path used for d_vocab=50257 runs.
    batch, seq, d_model, d_vocab = 2, 7, 48, 250
    init_range = 0.02

    key = jax.random.PRNGKey(0)
    kx, kw, kb = jax.random.split(key, 3)

    x = jax.random.normal(kx, (batch, seq, d_model), dtype=jnp.float32)
    # W_U ~ Normal(0, init_range); bias made nonzero purely to exercise the add.
    w_u = init_range * jax.random.normal(kw, (d_model, d_vocab), dtype=jnp.float32)
    b_u = 0.1 * jax.random.normal(kb, (d_vocab,), dtype=jnp.float32)

    logits = unembed(x, w_u, b_u)
    jax.block_until_ready(logits)

    # Reference check against plain JAX einsum (same math as the PyTorch forward).
    ref = jnp.einsum("bpd,dv->bpv", x, w_u) + b_u
    assert logits.shape == (batch, seq, d_vocab)
    assert jnp.allclose(logits, ref, atol=1e-5, rtol=1e-5)

    print("KERNEL_OK")
</pallas_src>

<mosaic_0001>
module attributes {stable_mosaic.version = 11 : i64} {
  func.func @_unembed_kernel(%arg0: i32, %arg1: i32, %arg2: memref<16x48xf32, #tpu.memory_space<vmem>>, %arg3: memref<48x256xf32, #tpu.memory_space<vmem>>, %arg4: memref<1x256xf32, #tpu.memory_space<vmem>>, %arg5: memref<16x256xf32, #tpu.memory_space<vmem>>) attributes {dimension_semantics = [#tpu.dimension_semantics<parallel>, #tpu.dimension_semantics<arbitrary>], iteration_bounds = array<i64: 1, 1>, scalar_prefetch = 0 : i64, scratch_operands = 0 : i64, tpu.core_type = #tpu.core_type<tc>, window_params = [{transform_indices = @transform_0, window_bounds = array<i64: 16, 48>}, {transform_indices = @transform_1, window_bounds = array<i64: 48, 256>}, {transform_indices = @transform_2, window_bounds = array<i64: 1, 256>}, {transform_indices = @transform_3, window_bounds = array<i64: 16, 256>}]} {
    %c0 = arith.constant 0 : index
    %c0_0 = arith.constant 0 : index
    %0 = vector.load %arg2[%c0, %c0_0] : memref<16x48xf32, #tpu.memory_space<vmem>>, vector<16x48xf32>
    %c0_1 = arith.constant 0 : index
    %c0_2 = arith.constant 0 : index
    %1 = vector.load %arg3[%c0_1, %c0_2] : memref<48x256xf32, #tpu.memory_space<vmem>>, vector<48x256xf32>
    %cst = arith.constant dense<0.000000e+00> : vector<16x256xf32>
    %2 = tpu.matmul %0, %1, %cst {dimension_numbers = #tpu.dot_dimension_numbers<[1], [0], [0], [1], [0, 0, 1, 1], [], []>} : vector<16x48xf32>, vector<48x256xf32>, vector<16x256xf32> -> vector<16x256xf32>
    %c0_3 = arith.constant 0 : index
    %c0_4 = arith.constant 0 : index
    %3 = vector.load %arg4[%c0_3, %c0_4] : memref<1x256xf32, #tpu.memory_space<vmem>>, vector<1x256xf32>
    %4 = vector.broadcast %3 : vector<1x256xf32> to vector<16x256xf32>
    %5 = arith.addf %2, %4 : vector<16x256xf32>
    %c0_5 = arith.constant 0 : index
    %c0_6 = arith.constant 0 : index
    %6 = vector.load %arg5[%c0_5, %c0_6] : memref<16x256xf32, #tpu.memory_space<vmem>>, vector<16x256xf32>
    tpu.vector_store %arg5[%c0_5, %c0_6], %5 {strides = array<i32>} : memref<16x256xf32, #tpu.memory_space<vmem>>, vector<16x256xf32>,
    return
  }
  func.func @transform_0(%arg0: i32, %arg1: i32) -> (i32, i32) {
    %c0_i32 = arith.constant 0 : i32
    %c0_i32_0 = arith.constant 0 : i32
    return %arg1, %c0_i32 : i32, i32
  }
  func.func @transform_1(%arg0: i32, %arg1: i32) -> (i32, i32) {
    %c0_i32 = arith.constant 0 : i32
    %c0_i32_0 = arith.constant 0 : i32
    return %c0_i32, %arg0 : i32, i32
  }
  func.func @transform_2(%arg0: i32, %arg1: i32) -> (i32, i32) {
    %c0_i32 = arith.constant 0 : i32
    %c0_i32_0 = arith.constant 0 : i32
    return %c0_i32, %arg0 : i32, i32
  }
  func.func @transform_3(%arg0: i32, %arg1: i32) -> (i32, i32) {
    %c0_i32 = arith.constant 0 : i32
    return %arg1, %arg0 : i32, i32
  }
}

</mosaic_0001>

<bundles_post_ra>
// kernel: unembed.1
= control target key start
LH: loop header
LB: loop body
LE: loop exit
PB: predicated region body
PF: predicated region fallthrough
CT: control target
= control target key end

     0   :  { %8 = vsyncpa [#allocation3], 0  ;;  %s157_s15 = smov [#allocation2]   ;;  %s158_s17 = smov 256   ;;  %s204_s0 = inlined_call_operand.vmem [shape: f32[14,48], index: 0, kind: input, shape index: {}]   ;;  %s205_s1 = inlined_call_operand.hbm [shape: f32[48,250], index: 1, kind: input, shape index: {}]   ;;  %s206_s2 = inlined_call_operand.vmem [shape: f32[1,250], index: 2, kind: input, shape index: {}]   ;;  %s207_s3 = inlined_call_operand.vmem [shape: f32[14,250], index: 3, kind: output, shape index: {}]  }
   0x1   :  { %s15_s14 = sshll.u32 %s205_s1, 4  ;;  %s17_s16 = sshll.u32 %s157_s15, 4  ;;  %s16_s14 = int_to_ptr.hbm [resolvable:$true] %s15_s14  ;;  %s18_s16 = int_to_ptr.vmem [resolvable:$true] %s17_s16 }
   0x2   :  { %s159_s18 = smov 16  }
   0x3   :  { %23 = dma.hbm_to_vmem [thread:$0]  %s16_s14, 1536, %s18_s16, [#allocation3], %s158_s17, %s158_s17, %s159_s18  }
   0x4   :  { %155 = dma.done.wait [#allocation3], 1536  }
   0x5   :  { %156 = vsyncadd [#allocation3], 4294965760  ;;  %v42_v0 = vld [vmem:[#allocation2 + $0x50] sm:$0xff]  ;;  %v43_v1 = vld [vmem:[#allocation2 + $0x58] sm:$0xff]  ;;  %vm50_vm0 = vcmask 392192  }
   0x6   :  { %v40_v2 = vld [vmem:[#allocation2 + $0x40] sm:$0xff]  ;;  %116 = vmatpush.msra.mxu2 %v42_v0  ;;  %122 = vmatpush.msra.mxu3 %v43_v1  ;;  %v41_v3 = vld [vmem:[#allocation2 + $0x48] sm:$0xff]  ;;  %v38_v4 = vld [vmem:[#allocation2 + $0x30] sm:$0xff] }
   0x7   :  { %v39_v5 = vld [vmem:[#allocation2 + $0x38] sm:$0xff]  ;;  %67 = vmatpush.msra.mxu0 %v42_v0  ;;  %90 = vmatpush.msra.mxu1 %v43_v1  ;;  %v36_v6 = vld [vmem:[#allocation2 + $0x20] sm:$0xff]  ;;  %v37_v7 = vld [vmem:[#allocation2 + $0x28] sm:$0xff] }
   0x8   :  { %117 = vmatpush.msra.mxu2 %v40_v2  ;;  %123 = vmatpush.msra.mxu3 %v41_v3  ;;  %v34_v8 = vld [vmem:[#allocation2 + $0x10] sm:$0xff]  ;;  %v35_v9 = vld [vmem:[#allocation2 + $0x18] sm:$0xff]  ;;  %v32_v10 = vld [vmem:[#allocation2] sm:$0xff] }
   0x9   :  { %68 = vmatpush.msra.mxu0 %v40_v2  ;;  %91 = vmatpush.msra.mxu1 %v41_v3  ;;  %v33_v11 = vld [vmem:[#allocation2 + $0x8] sm:$0xff]  ;;  %v30_v13 = vld [vmem:[%s204_s0] sm:$0xff] }
   0xa   :  { %118 = vmatpush.msra.mxu2 %v38_v4  ;;  %124 = vmatpush.msra.mxu3 %v39_v5  ;;  %v31_v12 = vld [vmem:[%s204_s0 + $0x8] sm:$0xff]  ;;  %v44_v14 = vld [vmem:[%s206_s2] sm:$0x3] }
   0xb   :  { %69 = vmatpush.msra.mxu0 %v38_v4  ;;  %92 = vmatpush.msra.mxu1 %v39_v5  ;;  %v46_v15 = vperm.slane %v44_v14, 0  ;;  %v47_v16 = vperm.slane %v44_v14, 1 }
   0xc   :  { %119 = vmatpush.msra.mxu2 %v36_v6  ;;  %125 = vmatpush.msra.mxu3 %v37_v7 }
   0xd   :  { %70 = vmatpush.msra.mxu0 %v36_v6  ;;  %93 = vmatpush.msra.mxu1 %v37_v7 }
   0xe   :  { %120 = vmatpush.msra.mxu2 %v34_v8  ;;  %126 = vmatpush.msra.mxu3 %v35_v9 }
   0xf   :  { %71 = vmatpush.msra.mxu0 %v34_v8  ;;  %94 = vmatpush.msra.mxu1 %v35_v9 }
  0x10   :  { %121 = vmatpush.msra.mxu2 %v32_v10  ;;  %127 = vmatpush.msra.mxu3 %v33_v11 }
  0x11   :  { %113 = vmatmul.msk.f32.vlgmr.msra.gmra.mxu2 %vm50_vm0, %v31_v12  ;;  %115 = vmatmul.msk.f32.vlgmr.msra.gmra.mxu3 %vm50_vm0, %v31_v12 }
  0x12   :  { %72 = vmatpush.msra.mxu0 %v32_v10  ;;  %95 = vmatpush.msra.mxu1 %v33_v11 }
  0x13   :  { %112 = vmatmul.msk.f32.vlgmr.msra.gmra.mxu0 %vm50_vm0, %v30_v13  ;;  %114 = vmatmul.msk.f32.vlgmr.msra.gmra.mxu1 %vm50_vm0, %v30_v13 }
  0x90   :  { %v74_v17 = vpop.f32.mrf.mxu0  ;;  %v97_v18 = vpop.f32.mrf.mxu1 }
  0x91   :  { %v75_v19 = vadd.f32 %v74_v17, %v46_v15  ;;  %v98_v20 = vadd.f32 %v97_v18, %v47_v16 }
  0x93   :  { %103 = vst [vmem:[%s207_s3] sm:$0xff] %v75_v19 }
  0x94   :  { %v77_v21 = vpop.f32.mrf.mxu2  ;;  %104 = vst [vmem:[%s207_s3 + $0x8] sm:$0xff] %v98_v20  ;;  %v100_v22 = vpop.f32.mrf.mxu3 }
  0x95   :  { %v78_v23 = vadd.f32 %v77_v21, %v46_v15  ;;  %v101_v24 = vadd.f32 %v100_v22, %v47_v16 }
  0x97   :  { %105 = vst [vmem:[%s207_s3 + $0x10] sm:$0xff] %v78_v23 }
  0x98   :  { %106 = vst [vmem:[%s207_s3 + $0x18] sm:$0xff] %v101_v24 }
  0x99   :  { %111 = vsyncpa [#allocation3], 1 }

</bundles_post_ra>
